<compile_context>
chip_gen: v7x
topology: tpu7x:2x2x1
jax: 0.10.0
libtpu: 0.0.40
codegen_flags: <defaults>
</compile_context>

<pallas_src>
import jax
import jax.numpy as jnp
from jax.experimental import pallas as pl
from jax.experimental.pallas import tpu as pltpu

HIDDEN = 200  # as in the PyTorch module


def _round_up(n, m):
    return (n + m - 1) // m * m


def mlp_kernel(x_ref, w1_ref, b1_ref, w2_ref, b2_ref, w3_ref, b3_ref, o_ref):
    # fc1 + ReLU (MXU matmul, f32 accumulation; epilogue stays f32)
    h1 = jnp.dot(x_ref[...], w1_ref[...], preferred_element_type=jnp.float32)
    h1 = jnp.maximum(h1 + b1_ref[...].astype(jnp.float32), 0.0)
    # fc2 + ReLU (cast activations to the weight dtype so bf16 weights take the
    # fast MXU path; for f32 weights the cast is a no-op)
    h2 = jnp.dot(h1.astype(w2_ref.dtype), w2_ref[...],
                 preferred_element_type=jnp.float32)
    h2 = jnp.maximum(h2 + b2_ref[...].astype(jnp.float32), 0.0)
    # fc3 (no activation)
    out = jnp.dot(h2.astype(w3_ref.dtype), w3_ref[...],
                  preferred_element_type=jnp.float32)
    o_ref[...] = (out + b3_ref[...].astype(jnp.float32)).astype(o_ref.dtype)


def prepare_params(params, dtype=jnp.float32):
    """One-time param prep (hoisted out of the forward path):
    zero-pad the hidden dim (200 -> 256) to a 128-lane multiple and cast to
    `dtype` (use jnp.bfloat16 for the recommended fast MXU path).
    Padding is mathematically a no-op: padded columns of W1/b1 give h1 cols of
    relu(0)=0, which meet zero rows of W2/W3; padded W2 columns likewise give
    zero h2 columns."""
    hid = params["w1"].shape[1]
    hp = _round_up(hid, 128)
    ph = hp - hid
    return {
        "w1": jnp.pad(params["w1"], ((0, 0), (0, ph))).astype(dtype),
        "b1": jnp.pad(params["b1"], ((0, 0), (0, ph))).astype(dtype),
        "w2": jnp.pad(params["w2"], ((0, ph), (0, ph))).astype(dtype),
        "b2": jnp.pad(params["b2"], ((0, 0), (0, ph))).astype(dtype),
        "w3": jnp.pad(params["w3"], ((0, ph), (0, 0))).astype(dtype),
        "b3": params["b3"].astype(dtype),
    }


def two_hidden_layer_fc(x, padded_params, *, tile_b=2048):
    """x: (B, D_in). padded_params: output of prepare_params().
    Returns (B, out_dim) in x.dtype."""
    w1, b1 = padded_params["w1"], padded_params["b1"]
    w2, b2 = padded_params["w2"], padded_params["b2"]
    w3, b3 = padded_params["w3"], padded_params["b3"]

    B, d_in = x.shape
    out_dim = w3.shape[1]

    # Adaptive batch tile: choose the number of grid steps implied by tile_b,
    # then split the batch evenly (rounded to 8 sublanes) to minimize padded
    # (wasted) rows.
    n_steps = max(1, -(-B // tile_b))
    tb = _round_up(-(-B // n_steps), 8)
    bp = _round_up(B, tb)
    xp = jnp.pad(x, ((0, bp - B), (0, 0))) if bp != B else x
    grid = (bp // tb,)

    # Constant block index -> weights/biases DMA'd once, VMEM-resident.
    def resident(a):
        return pl.BlockSpec(a.shape, lambda i: (0,) * a.ndim)

    out = pl.pallas_call(
        mlp_kernel,
        out_shape=jax.ShapeDtypeStruct((bp, out_dim), x.dtype),
        grid=grid,
        in_specs=[pl.BlockSpec((tb, d_in), lambda i: (i, 0)),
                  resident(w1), resident(b1),
                  resident(w2), resident(b2),
                  resident(w3), resident(b3)],
        # Output last dim == true out_dim (== full array extent): no lane
        # padding, no write amplification, no wrapper slice over lanes.
        out_specs=pl.BlockSpec((tb, out_dim), lambda i: (i, 0)),
        compiler_params=pltpu.CompilerParams(
            dimension_semantics=("parallel",)),
    )(xp, w1, b1, w2, b2, w3, b3)

    return out if bp == B else out[:B]


def init_params(key, input_shape, out_dim):
    """Deterministic init mimicking nn.Linear's U(-1/sqrt(fan_in), 1/sqrt(fan_in)).
    Weights stored already transposed: (fan_in, fan_out); biases (1, fan_out)."""
    ks = jax.random.split(key, 6)

    def lin(kw, kb, fan_in, fan_out):
        bound = 1.0 / jnp.sqrt(fan_in)
        w_t = jax.random.uniform(kw, (fan_in, fan_out), jnp.float32, -bound, bound)
        b = jax.random.uniform(kb, (1, fan_out), jnp.float32, -bound, bound)
        return w_t, b

    w1, b1 = lin(ks[0], ks[1], input_shape, HIDDEN)
    w2, b2 = lin(ks[2], ks[3], HIDDEN, HIDDEN)
    w3, b3 = lin(ks[4], ks[5], HIDDEN, out_dim)
    return {"w1": w1, "b1": b1, "w2": w2, "b2": b2, "w3": w3, "b3": b3}


def reference_forward(x, params):
    """Pure-JAX reference mirroring the kernel's mixed precision (f32 accumulation)."""
    f32 = jnp.float32
    h1 = jnp.dot(x, params["w1"], preferred_element_type=f32)
    h1 = jnp.maximum(h1 + params["b1"].astype(f32), 0.0)
    h2 = jnp.dot(h1.astype(params["w2"].dtype), params["w2"],
                 preferred_element_type=f32)
    h2 = jnp.maximum(h2 + params["b2"].astype(f32), 0.0)
    out = jnp.dot(h2.astype(params["w3"].dtype), params["w3"],
                  preferred_element_type=f32)
    return out + params["b3"].astype(f32)


if __name__ == "__main__":
    key = jax.random.PRNGKey(0)
    k_x, k_p = jax.random.split(key)

    batch, input_shape, out_dim = 8, 64, 16
    x = jax.random.normal(k_x, (batch, input_shape), jnp.float32)
    params = init_params(k_p, input_shape, out_dim)

    fwd = jax.jit(two_hidden_layer_fc, static_argnames=("tile_b",))

    # --- f32 path (small batch, single tile) ---
    p_f32 = prepare_params(params, jnp.float32)      # padded once, reused below
    out = jax.block_until_ready(fwd(x, p_f32))
    ref = reference_forward(x, params)
    assert out.shape == (batch, out_dim)
    assert jnp.allclose(out, ref, atol=1e-4, rtol=1e-4), "f32 mismatch vs reference"

    # --- bf16 weight/activation fast path (recommended default on v5e/v6e/v7x),
    #     f32 accumulation, bf16 output writes ---
    p_bf16 = prepare_params(params, jnp.bfloat16)
    x_bf16 = x.astype(jnp.bfloat16)
    out_bf = jax.block_until_ready(fwd(x_bf16, p_bf16))
    params_bf16 = jax.tree_util.tree_map(lambda p: p.astype(jnp.bfloat16), params)
    ref_bf = reference_forward(x_bf16, params_bf16)
    assert out_bf.shape == (batch, out_dim)
    assert out_bf.dtype == jnp.bfloat16
    assert jnp.allclose(out_bf.astype(jnp.float32), ref_bf,
                        atol=2e-2, rtol=2e-2), "bf16 mismatch vs reference"

    # --- larger, non-multiple batch exercising the adaptive grid / pipelining ---
    big_batch = 1064
    xb = jax.random.normal(k_x, (big_batch, input_shape), jnp.float32)
    out_b = jax.block_until_ready(fwd(xb, p_f32, tile_b=512))   # 3 steps of 360 rows
    ref_b = reference_forward(xb, params)
    assert out_b.shape == (big_batch, out_dim)
    assert jnp.allclose(out_b, ref_b, atol=1e-4, rtol=1e-4), "tiled mismatch vs reference"

    # --- default (large) tile on the same batch: single step, max amortization ---
    out_b2 = jax.block_until_ready(fwd(xb, p_f32))
    assert jnp.allclose(out_b2, ref_b, atol=1e-4, rtol=1e-4), "large-tile mismatch"

    print("KERNEL_OK")
</pallas_src>

<mosaic_0001>
module attributes {stable_mosaic.version = 11 : i64} {
  func.func @mlp_kernel(%arg0: i32, %arg1: memref<8x64xf32, #tpu.memory_space<vmem>>, %arg2: memref<64x256xf32, #tpu.memory_space<vmem>>, %arg3: memref<1x256xf32, #tpu.memory_space<vmem>>, %arg4: memref<256x256xf32, #tpu.memory_space<vmem>>, %arg5: memref<1x256xf32, #tpu.memory_space<vmem>>, %arg6: memref<256x16xf32, #tpu.memory_space<vmem>>, %arg7: memref<1x16xf32, #tpu.memory_space<vmem>>, %arg8: memref<8x16xf32, #tpu.memory_space<vmem>>) attributes {dimension_semantics = [#tpu.dimension_semantics<parallel>], iteration_bounds = array<i64: 1>, scalar_prefetch = 0 : i64, scratch_operands = 0 : i64, tpu.core_type = #tpu.core_type<tc>, window_params = [{transform_indices = @transform_0, window_bounds = array<i64: 8, 64>}, {pipeline_mode = #tpu.pipeline_mode<synchronous>, transform_indices = @transform_1, window_bounds = array<i64: 64, 256>}, {pipeline_mode = #tpu.pipeline_mode<synchronous>, transform_indices = @transform_2, window_bounds = array<i64: 1, 256>}, {pipeline_mode = #tpu.pipeline_mode<synchronous>, transform_indices = @transform_3, window_bounds = array<i64: 256, 256>}, {pipeline_mode = #tpu.pipeline_mode<synchronous>, transform_indices = @transform_4, window_bounds = array<i64: 1, 256>}, {pipeline_mode = #tpu.pipeline_mode<synchronous>, transform_indices = @transform_5, window_bounds = array<i64: 256, 16>}, {pipeline_mode = #tpu.pipeline_mode<synchronous>, transform_indices = @transform_6, window_bounds = array<i64: 1, 16>}, {transform_indices = @transform_7, window_bounds = array<i64: 8, 16>}]} {
    %c0 = arith.constant 0 : index
    %c0_0 = arith.constant 0 : index
    %0 = vector.load %arg1[%c0, %c0_0] : memref<8x64xf32, #tpu.memory_space<vmem>>, vector<8x64xf32>
    %c0_1 = arith.constant 0 : index
    %c0_2 = arith.constant 0 : index
    %1 = vector.load %arg2[%c0_1, %c0_2] : memref<64x256xf32, #tpu.memory_space<vmem>>, vector<64x256xf32>
    %cst = arith.constant dense<0.000000e+00> : vector<8x256xf32>
    %2 = tpu.matmul %0, %1, %cst {dimension_numbers = #tpu.dot_dimension_numbers<[1], [0], [0], [1], [0, 0, 1, 1], [], []>} : vector<8x64xf32>, vector<64x256xf32>, vector<8x256xf32> -> vector<8x256xf32>
    %c0_3 = arith.constant 0 : index
    %c0_4 = arith.constant 0 : index
    %3 = vector.load %arg3[%c0_3, %c0_4] : memref<1x256xf32, #tpu.memory_space<vmem>>, vector<1x256xf32>
    %4 = vector.broadcast %3 : vector<1x256xf32> to vector<8x256xf32>
    %5 = arith.addf %2, %4 : vector<8x256xf32>
    %cst_5 = arith.constant 0.000000e+00 : f32
    %6 = vector.broadcast %cst_5 : f32 to vector<8x256xf32>
    %7 = arith.maximumf %5, %6 : vector<8x256xf32>
    %c0_6 = arith.constant 0 : index
    %c0_7 = arith.constant 0 : index
    %8 = vector.load %arg4[%c0_6, %c0_7] : memref<256x256xf32, #tpu.memory_space<vmem>>, vector<256x256xf32>
    %cst_8 = arith.constant dense<0.000000e+00> : vector<8x256xf32>
    %9 = tpu.matmul %7, %8, %cst_8 {dimension_numbers = #tpu.dot_dimension_numbers<[1], [0], [0], [1], [0, 0, 1, 1], [], []>} : vector<8x256xf32>, vector<256x256xf32>, vector<8x256xf32> -> vector<8x256xf32>
    %c0_9 = arith.constant 0 : index
    %c0_10 = arith.constant 0 : index
    %10 = vector.load %arg5[%c0_9, %c0_10] : memref<1x256xf32, #tpu.memory_space<vmem>>, vector<1x256xf32>
    %11 = vector.broadcast %10 : vector<1x256xf32> to vector<8x256xf32>
    %12 = arith.addf %9, %11 : vector<8x256xf32>
    %cst_11 = arith.constant 0.000000e+00 : f32
    %13 = vector.broadcast %cst_11 : f32 to vector<8x256xf32>
    %14 = arith.maximumf %12, %13 : vector<8x256xf32>
    %c0_12 = arith.constant 0 : index
    %c0_13 = arith.constant 0 : index
    %15 = vector.load %arg6[%c0_12, %c0_13] : memref<256x16xf32, #tpu.memory_space<vmem>>, vector<256x16xf32>
    %cst_14 = arith.constant dense<0.000000e+00> : vector<8x16xf32>
    %16 = tpu.matmul %14, %15, %cst_14 {dimension_numbers = #tpu.dot_dimension_numbers<[1], [0], [0], [1], [0, 0, 1, 1], [], []>} : vector<8x256xf32>, vector<256x16xf32>, vector<8x16xf32> -> vector<8x16xf32>
    %c0_15 = arith.constant 0 : index
    %c0_16 = arith.constant 0 : index
    %17 = vector.load %arg7[%c0_15, %c0_16] : memref<1x16xf32, #tpu.memory_space<vmem>>, vector<1x16xf32>
    %18 = vector.broadcast %17 : vector<1x16xf32> to vector<8x16xf32>
    %19 = arith.addf %16, %18 : vector<8x16xf32>
    %c0_17 = arith.constant 0 : index
    %c0_18 = arith.constant 0 : index
    %20 = vector.load %arg8[%c0_17, %c0_18] : memref<8x16xf32, #tpu.memory_space<vmem>>, vector<8x16xf32>
    tpu.vector_store %arg8[%c0_17, %c0_18], %19 {strides = array<i32>} : memref<8x16xf32, #tpu.memory_space<vmem>>, vector<8x16xf32>,
    return
  }
  func.func @transform_0(%arg0: i32) -> (i32, i32) {
    %c0_i32 = arith.constant 0 : i32
    %c0_i32_0 = arith.constant 0 : i32
    return %arg0, %c0_i32 : i32, i32
  }
  func.func @transform_1(%arg0: i32) -> (i32, i32) {
    %c0_i32 = arith.constant 0 : i32
    %c0_i32_0 = arith.constant 0 : i32
    %c0_i32_1 = arith.constant 0 : i32
    return %c0_i32, %c0_i32_0 : i32, i32
  }
  func.func @transform_2(%arg0: i32) -> (i32, i32) {
    %c0_i32 = arith.constant 0 : i32
    %c0_i32_0 = arith.constant 0 : i32
    %c0_i32_1 = arith.constant 0 : i32
    return %c0_i32, %c0_i32_0 : i32, i32
  }
  func.func @transform_3(%arg0: i32) -> (i32, i32) {
    %c0_i32 = arith.constant 0 : i32
    %c0_i32_0 = arith.constant 0 : i32
    %c0_i32_1 = arith.constant 0 : i32
    return %c0_i32, %c0_i32_0 : i32, i32
  }
  func.func @transform_4(%arg0: i32) -> (i32, i32) {
    %c0_i32 = arith.constant 0 : i32
    %c0_i32_0 = arith.constant 0 : i32
    %c0_i32_1 = arith.constant 0 : i32
    return %c0_i32, %c0_i32_0 : i32, i32
  }
  func.func @transform_5(%arg0: i32) -> (i32, i32) {
    %c0_i32 = arith.constant 0 : i32
    %c0_i32_0 = arith.constant 0 : i32
    %c0_i32_1 = arith.constant 0 : i32
    return %c0_i32, %c0_i32_0 : i32, i32
  }
  func.func @transform_6(%arg0: i32) -> (i32, i32) {
    %c0_i32 = arith.constant 0 : i32
    %c0_i32_0 = arith.constant 0 : i32
    %c0_i32_1 = arith.constant 0 : i32
    return %c0_i32, %c0_i32_0 : i32, i32
  }
  func.func @transform_7(%arg0: i32) -> (i32, i32) {
    %c0_i32 = arith.constant 0 : i32
    %c0_i32_0 = arith.constant 0 : i32
    return %arg0, %c0_i32 : i32, i32
  }
}

</mosaic_0001>

<bundles_post_ra>
// kernel: two_hidden_layer_fc.1
= control target key start
LH: loop header
LB: loop body
LE: loop exit
PB: predicated region body
PF: predicated region fallthrough
CT: control target
= control target key end

     0   :  { %12 = vsyncpa [#allocation3], 0  ;;  %s849_s0 = inlined_call_operand.vmem [shape: f32[8,64], index: 0, kind: input, shape index: {}]   ;;  %s850_s1 = inlined_call_operand.vmem [shape: f32[64,256], index: 1, kind: input, shape index: {}]   ;;  %s851_s2 = inlined_call_operand.vmem [shape: f32[1,256], index: 2, kind: input, shape index: {}]   ;;  %s852_s3 = inlined_call_operand.hbm [shape: f32[256,256], index: 3, kind: input, shape index: {}]   ;;  %s853_s4 = inlined_call_operand.vmem [shape: f32[1,256], index: 4, kind: input, shape index: {}]   ;;  %s854_s5 = inlined_call_operand.vmem [shape: f32[256,16], index: 5, kind: input, shape index: {}]   ;;  %s855_s6 = inlined_call_operand.vmem [shape: f32[1,16], index: 6, kind: input, shape index: {}]   ;;  %s856_s7 = inlined_call_operand.hbm [shape: f32[8,16], index: 7, kind: output, shape index: {}]  }
   0x1   :  { %13 = vsyncpa [#allocation4], 0  ;;  %s624_s24 = smov [#allocation2]   ;;  %s576_s28 = scalar_lea.hbm %s852_s3, 8192 }
   0x2   :  { %s25_s25 = sshll.u32 %s624_s24, 4  ;;  %p577_p0 = scmp.ne.s32.totalorder %s852_s3, %s576_s28  ;;  %s26_s25 = int_to_ptr.vmem [resolvable:$true] %s25_s25 }
   0x3   :  { %p580_p1 = scmp.lt.u32.totalorder %s576_s28, %s852_s3 }
   0x5   :  { %p582_p2 = pnand %p580_p1, %p577_p0 }
   0x7   :  { %585 = shalt.err (!%p582_p2)
}
   0x8   :  { %s586_s10 = scalar_lea.vmem %s26_s25, 8192  ;;  %p591_p4 = scmp.lt.s32.totalorder %s26_s25, %s26_s25 }
   0x9   :  { %p587_p3 = scmp.ne.s32.totalorder %s26_s25, %s586_s10  ;;  %p592_p5 = scmp.lt.s32.totalorder %s586_s10, %s586_s10 }
   0xb   :  { %p593_p6 = por %p592_p5, %p591_p4 }
   0xd   :  { %p594_p7 = pnand %p593_p6, %p587_p3 }
   0xf   :  { %597 = shalt.err (!%p594_p7)
}
  0x10   :  { %s625_s11 = smov 256   ;;  %s626_s12 = smov 16  }
  0x11   :  { %31 = dma.hbm_to_vmem [thread:$0]  %s852_s3, 8192, %s26_s25, [#allocation3], %s625_s11, %s625_s11, %s626_s12  }
  0x12   :  { %620 = dma.done.wait [#allocation3], 8192  }
  0x13   :  { %621 = vsyncadd [#allocation3], 4294959104  ;;  %v627_v0 = vmov 0.0   ;;  %v43_v1 = vld [vmem:[%s850_s1 + $0x8] sm:$0xff]  ;;  %v45_v2 = vld [vmem:[%s850_s1 + $0x18] sm:$0xff]  ;;  %vm70_vm0 = vcmask 523264  }
  0x14   :  { %138 = vmatprep.mubr.f32.mxu0 %v627_v0  ;;  %v42_v3 = vld [vmem:[%s850_s1] sm:$0xff]  ;;  %v459_v4 = vpack.c.bf16 %v45_v2, %v43_v1  ;;  %v44_v5 = vld [vmem:[%s850_s1 + $0x10] sm:$0xff]  ;;  %v47_v6 = vld [vmem:[%s850_s1 + $0x28] sm:$0xff]  ;;  %s628_s15 = smov [#allocation5]   ;;  %vm405_vm1 = vcmask 130048  }
  0x15   :  { %v49_v7 = vld [vmem:[%s850_s1 + $0x38] sm:$0xff]  ;;  %v461_v8 = vpack.c.bf16 %v44_v5, %v42_v3  ;;  %v46_v10 = vld [vmem:[%s850_s1 + $0x20] sm:$0xff]  ;;  %v48_v11 = vld [vmem:[%s850_s1 + $0x30] sm:$0xff]  ;;  %s413_s16 = sshll.u32 %s628_s15, 4  ;;  %s414_s16 = int_to_ptr.vmem [resolvable:$true] %s413_s16 }
  0x16   :  { %v463_v9 = vpack.c.bf16 %v49_v7, %v47_v6  ;;  %v51_v12 = vld [vmem:[%s850_s1 + $0x48] sm:$0xff]  ;;  %460 = vmatprep.subr.bf16.mxu0 %v459_v4  ;;  %v53_v13 = vld [vmem:[%s850_s1 + $0x58] sm:$0xff]  ;;  %v465_v14 = vpack.c.bf16 %v48_v11, %v46_v10  ;;  %v50_v15 = vld [vmem:[%s850_s1 + $0x40] sm:$0xff]  ;;  %p603_p9 = scmp.lt.s32.totalorder %s414_s16, %s414_s16 }
  0x17   :  { %462 = vmatpush1.bf16.msra.mxu0 %v461_v8  ;;  %v52_v16 = vld [vmem:[%s850_s1 + $0x50] sm:$0xff]  ;;  %v467_v17 = vpack.c.bf16 %v53_v13, %v51_v12  ;;  %v55_v18 = vld [vmem:[%s850_s1 + $0x68] sm:$0xff]  ;;  %v57_v19 = vld [vmem:[%s850_s1 + $0x78] sm:$0xff] }
  0x18   :  { %464 = vmatprep.subr.bf16.mxu0 %v463_v9  ;;  %v148_v20 = vld [vmem:[#allocation2 + $0x8] sm:$0xff]  ;;  %v150_v21 = vld [vmem:[#allocation2 + $0x18] sm:$0xff]  ;;  %v147_v22 = vld [vmem:[#allocation2] sm:$0xff]  ;;  %v469_v29 = vpack.c.bf16 %v52_v16, %v50_v15  ;;  %v471_v34 = vpack.c.bf16 %v57_v19, %v55_v18 }
  0x19   :  { %v149_v23 = vld [vmem:[#allocation2 + $0x10] sm:$0xff]  ;;  %v475_v24 = vpack.c.bf16 %v150_v21, %v148_v20  ;;  %v152_v26 = vld [vmem:[#allocation2 + $0x28] sm:$0xff]  ;;  %v154_v27 = vld [vmem:[#allocation2 + $0x38] sm:$0xff] }
  0x1a   :  { %v477_v25 = vpack.c.bf16 %v149_v23, %v147_v22  ;;  %v151_v28 = vld [vmem:[#allocation2 + $0x20] sm:$0xff]  ;;  %v479_v30 = vpack.c.bf16 %v154_v27, %v152_v26  ;;  %v153_v31 = vld [vmem:[#allocation2 + $0x30] sm:$0xff]  ;;  %v156_v32 = vld [vmem:[#allocation2 + $0x48] sm:$0xff] }
  0x1b   :  { %466 = vmatpush1.bf16.msra.mxu0 %v465_v14  ;;  %v158_v33 = vld [vmem:[#allocation2 + $0x58] sm:$0xff]  ;;  %v54_v35 = vld [vmem:[%s850_s1 + $0x60] sm:$0xff]  ;;  %v56_v36 = vld [vmem:[%s850_s1 + $0x70] sm:$0xff]  ;;  %476 = vmatprep.subr.bf16.mxu1 %v475_v24  ;;  %v481_v37 = vpack.c.bf16 %v153_v31, %v151_v28 }
  0x1c   :  { %468 = vmatprep.subr.bf16.mxu0 %v467_v17  ;;  %478 = vmatpush1.bf16.msra.mxu1 %v477_v25  ;;  %v483_v38 = vpack.c.bf16 %v158_v33, %v156_v32  ;;  %v155_v39 = vld [vmem:[#allocation2 + $0x40] sm:$0xff]  ;;  %v157_v40 = vld [vmem:[#allocation2 + $0x50] sm:$0xff]  ;;  %v473_v41 = vpack.c.bf16 %v56_v36, %v54_v35  ;;  %v160_v42 = vld [vmem:[#allocation2 + $0x68] sm:$0xff] }
  0x1d   :  { %480 = vmatprep.subr.bf16.mxu1 %v479_v30  ;;  %v162_v43 = vld [vmem:[#allocation2 + $0x78] sm:$0xff]  ;;  %v485_v44 = vpack.c.bf16 %v157_v40, %v155_v39  ;;  %v159_v46 = vld [vmem:[#allocation2 + $0x60] sm:$0xff]  ;;  %v161_v47 = vld [vmem:[#allocation2 + $0x70] sm:$0xff] }
  0x1e   :  { %v487_v45 = vpack.c.bf16 %v162_v43, %v160_v42  ;;  %v41_v48 = vld [vmem:[%s849_s0] sm:$0xff]  ;;  %v164_v49 = vld [vmem:[#allocation2 + $0x88] sm:$0xff]  ;;  %v166_v50 = vld [vmem:[#allocation2 + $0x98] sm:$0xff]  ;;  %v489_v51 = vpack.c.bf16 %v161_v47, %v159_v46 }
  0x1f   :  { %470 = vmatpush1.bf16.msra.mxu0 %v469_v29  ;;  %v491_v52 = vpack.c.bf16 %v166_v50, %v164_v49  ;;  %v163_v53 = vld [vmem:[#allocation2 + $0x80] sm:$0xff]  ;;  %v165_v54 = vld [vmem:[#allocation2 + $0x90] sm:$0xff]  ;;  %v168_v55 = vld [vmem:[#allocation2 + $0xa8] sm:$0xff] }
  0x20   :  { %472 = vmatprep.subr.bf16.mxu0 %v471_v34  ;;  %482 = vmatpush1.bf16.msra.mxu1 %v481_v37  ;;  %v170_v56 = vld [vmem:[#allocation2 + $0xb8] sm:$0xff]  ;;  %v493_v57 = vpack.c.bf16 %v165_v54, %v163_v53  ;;  %v167_v59 = vld [vmem:[#allocation2 + $0xa0] sm:$0xff]  ;;  %v169_v60 = vld [vmem:[#allocation2 + $0xb0] sm:$0xff] }
  0x21   :  { %484 = vmatprep.subr.bf16.mxu1 %v483_v38  ;;  %v495_v58 = vpack.c.bf16 %v170_v56, %v168_v55  ;;  %v172_v61 = vld [vmem:[#allocation2 + $0xc8] sm:$0xff]  ;;  %v174_v62 = vld [vmem:[#allocation2 + $0xd8] sm:$0xff]  ;;  %v497_v63 = vpack.c.bf16 %v169_v60, %v167_v59  ;;  %v171_v1 = vld [vmem:[#allocation2 + $0xc0] sm:$0xff] }
  0x22   :  { %v499_v0 = vpack.c.bf16 %v174_v62, %v172_v61  ;;  %v173_v2 = vld [vmem:[#allocation2 + $0xd0] sm:$0xff]  ;;  %v176_v3 = vld [vmem:[#allocation2 + $0xe8] sm:$0xff]  ;;  %v178_v4 = vld [vmem:[#allocation2 + $0xf8] sm:$0xff] }
  0x23   :  { %474 = vmatpush1.bf16.msra.mxu0 %v473_v41  ;;  %v501_v5 = vpack.c.bf16 %v173_v2, %v171_v1  ;;  %v503_v6 = vpack.c.bf16 %v178_v4, %v176_v3  ;;  %v175_v7 = vld [vmem:[#allocation2 + $0xe0] sm:$0xff]  ;;  %v177_v8 = vld [vmem:[#allocation2 + $0xf0] sm:$0xff]  ;;  %v180_v9 = vld [vmem:[#allocation2 + $0x108] sm:$0xff] }
  0x24   :  { %486 = vmatpush1.bf16.msra.mxu1 %v485_v44  ;;  %v182_v10 = vld [vmem:[#allocation2 + $0x118] sm:$0xff]  ;;  %v505_v11 = vpack.c.bf16 %v177_v8, %v175_v7  ;;  %v179_v13 = vld [vmem:[#allocation2 + $0x100] sm:$0xff]  ;;  %v181_v14 = vld [vmem:[#allocation2 + $0x110] sm:$0xff] }
  0x25   :  { %488 = vmatprep.subr.bf16.mxu1 %v487_v45  ;;  %v507_v12 = vpack.c.bf16 %v182_v10, %v180_v9  ;;  %v184_v15 = vld [vmem:[#allocation2 + $0x128] sm:$0xff]  ;;  %v186_v16 = vld [vmem:[#allocation2 + $0x138] sm:$0xff]  ;;  %v509_v17 = vpack.c.bf16 %v181_v14, %v179_v13  ;;  %v183_v19 = vld [vmem:[#allocation2 + $0x120] sm:$0xff] }
  0x26   :  { %422 = vmatmul.mubr.msk.f32.vlgmr.msra.gmra.mrb[0].mxu0 %vm70_vm0, %v41_v48  ;;  %v511_v18 = vpack.c.bf16 %v186_v16, %v184_v15  ;;  %v185_v20 = vld [vmem:[#allocation2 + $0x130] sm:$0xff]  ;;  %v188_v21 = vld [vmem:[#allocation2 + $0x148] sm:$0xff]  ;;  %v190_v22 = vld [vmem:[#allocation2 + $0x158] sm:$0xff] }
  0x27   :  { %v513_v23 = vpack.c.bf16 %v185_v20, %v183_v19  ;;  %v515_v24 = vpack.c.bf16 %v190_v22, %v188_v21  ;;  %v187_v25 = vld [vmem:[#allocation2 + $0x140] sm:$0xff]  ;;  %v189_v26 = vld [vmem:[#allocation2 + $0x150] sm:$0xff]  ;;  %v192_v27 = vld [vmem:[#allocation2 + $0x168] sm:$0xff] }
  0x28   :  { %490 = vmatpush1.bf16.msra.mxu1 %v489_v51  ;;  %v194_v28 = vld [vmem:[#allocation2 + $0x178] sm:$0xff]  ;;  %v517_v29 = vpack.c.bf16 %v189_v26, %v187_v25  ;;  %v191_v31 = vld [vmem:[#allocation2 + $0x160] sm:$0xff]  ;;  %v193_v32 = vld [vmem:[#allocation2 + $0x170] sm:$0xff] }
  0x29   :  { %492 = vmatprep.subr.bf16.mxu1 %v491_v52  ;;  %v519_v30 = vpack.c.bf16 %v194_v28, %v192_v27  ;;  %v196_v33 = vld [vmem:[#allocation2 + $0x188] sm:$0xff]  ;;  %v198_v34 = vld [vmem:[#allocation2 + $0x198] sm:$0xff]  ;;  %v521_v35 = vpack.c.bf16 %v193_v32, %v191_v31  ;;  %v195_v37 = vld [vmem:[#allocation2 + $0x180] sm:$0xff] }
  0x2a   :  { %v523_v36 = vpack.c.bf16 %v198_v34, %v196_v33  ;;  %v197_v38 = vld [vmem:[#allocation2 + $0x190] sm:$0xff]  ;;  %v200_v39 = vld [vmem:[#allocation2 + $0x1a8] sm:$0xff]  ;;  %v202_v40 = vld [vmem:[#allocation2 + $0x1b8] sm:$0xff]  ;;  %v60_v33 = vlaneseq }
  0x2b   :  { %v525_v41 = vpack.c.bf16 %v197_v38, %v195_v37  ;;  %v527_v42 = vpack.c.bf16 %v202_v40, %v200_v39  ;;  %v199_v43 = vld [vmem:[#allocation2 + $0x1a0] sm:$0xff]  ;;  %v201_v44 = vld [vmem:[#allocation2 + $0x1b0] sm:$0xff]  ;;  %v204_v45 = vld [vmem:[#allocation2 + $0x1c8] sm:$0xff] }
  0x2c   :  { %494 = vmatpush1.bf16.msra.mxu1 %v493_v57  ;;  %v206_v46 = vld [vmem:[#allocation2 + $0x1d8] sm:$0xff]  ;;  %v529_v47 = vpack.c.bf16 %v201_v44, %v199_v43  ;;  %v203_v49 = vld [vmem:[#allocation2 + $0x1c0] sm:$0xff]  ;;  %v205_v50 = vld [vmem:[#allocation2 + $0x1d0] sm:$0xff]  ;;  %v61_v34 = vshrl.u32 %v60_v33, 7 }
  0x2d   :  { %496 = vmatprep.subr.bf16.mxu1 %v495_v58  ;;  %v531_v48 = vpack.c.bf16 %v206_v46, %v204_v45  ;;  %v533_v51 = vpack.c.bf16 %v205_v50, %v203_v49  ;;  %v208_v52 = vld [vmem:[#allocation2 + $0x1e8] sm:$0xff]  ;;  %v210_v53 = vld [vmem:[#allocation2 + $0x1f8] sm:$0xff]  ;;  %v207_v55 = vld [vmem:[#allocation2 + $0x1e0] sm:$0xff] }
  0x2e   :  { %v535_v54 = vpack.c.bf16 %v210_v53, %v208_v52  ;;  %v209_v56 = vld [vmem:[#allocation2 + $0x1f0] sm:$0xff]  ;;  %v312_v58 = vld [vmem:[%s854_s5 + $0x80] sm:$0xff]  ;;  %v313_v59 = vld [vmem:[%s854_s5 + $0x88] sm:$0xff]  ;;  %v66_v37 = vsub.s32 1, %v61_v34 }
  0x2f   :  { %v537_v57 = vpack.c.bf16 %v209_v56, %v207_v55  ;;  %v296_v60 = vld [vmem:[%s854_s5] sm:$0xff]  ;;  %v539_v61 = vpack.c.bf16 %v313_v59, %v312_v58  ;;  %v297_v62 = vld [vmem:[%s854_s5 + $0x8] sm:$0xff]  ;;  %v298_v3 = vld [vmem:[%s854_s5 + $0x10] sm:$0xff] }
  0x30   :  { %498 = vmatpush1.bf16.msra.mxu1 %v497_v63  ;;  %v314_v63 = vld [vmem:[%s854_s5 + $0x90] sm:$0xff]  ;;  %v541_v1 = vpack.c.bf16 %v297_v62, %v296_v60  ;;  %v299_v4 = vld [vmem:[%s854_s5 + $0x18] sm:$0xff]  ;;  %v300_v9 = vld [vmem:[%s854_s5 + $0x20] sm:$0xff] }
  0x31   :  { %500 = vmatprep.subr.bf16.mxu1 %v499_v0  ;;  %v315_v0 = vld [vmem:[%s854_s5 + $0x98] sm:$0xff]  ;;  %540 = vmatprep.subr.bf16.mxu0 %v539_v61  ;;  %v545_v7 = vpack.c.bf16 %v299_v4, %v298_v3  ;;  %v301_v10 = vld [vmem:[%s854_s5 + $0x28] sm:$0xff]  ;;  %v302_v15 = vld [vmem:[%s854_s5 + $0x30] sm:$0xff] }
  0x32   :  { %v543_v2 = vpack.c.bf16 %v315_v0, %v314_v63  ;;  %542 = vmatpush3.bf16.msra.mxu0 %v541_v1  ;;  %v549_v13 = vpack.c.bf16 %v301_v10, %v300_v9  ;;  %v303_v16 = vld [vmem:[%s854_s5 + $0x38] sm:$0xff]  ;;  %v304_v21 = vld [vmem:[%s854_s5 + $0x40] sm:$0xff]  ;;  %v305_v22 = vld [vmem:[%s854_s5 + $0x48] sm:$0xff] }
  0x33   :  { %v553_v19 = vpack.c.bf16 %v303_v16, %v302_v15  ;;  %v557_v25 = vpack.c.bf16 %v305_v22, %v304_v21  ;;  %v306_v27 = vld [vmem:[%s854_s5 + $0x50] sm:$0xff]  ;;  %v307_v28 = vld [vmem:[%s854_s5 + $0x58] sm:$0xff]  ;;  %v308_v46 = vld [vmem:[%s854_s5 + $0x60] sm:$0xff] }
  0x34   :  { %502 = vmatpush1.bf16.msra.mxu1 %v501_v5  ;;  %v316_v5 = vld [vmem:[%s854_s5 + $0xa0] sm:$0xff]  ;;  %544 = vmatprep.subr.bf16.mxu0 %v543_v2  ;;  %v561_v31 = vpack.c.bf16 %v307_v28, %v306_v27  ;;  %v326_v49 = vld [vmem:[%s854_s5 + $0xf0] sm:$0xff]  ;;  %v327_v50 = vld [vmem:[%s854_s5 + $0xf8] sm:$0xff] }
  0x35   :  { %504 = vmatprep.subr.bf16.mxu1 %v503_v6  ;;  %v317_v6 = vld [vmem:[%s854_s5 + $0xa8] sm:$0xff]  ;;  %v310_v52 = vld [vmem:[%s854_s5 + $0x70] sm:$0xff]  ;;  %v311_v53 = vld [vmem:[%s854_s5 + $0x78] sm:$0xff] }
  0x36   :  { %v547_v8 = vpack.c.bf16 %v317_v6, %v316_v5  ;;  %546 = vmatpush3.bf16.msra.mxu0 %v545_v7  ;;  %v211_v55 = vld [vmem:[%s853_s4] sm:$0x3]  ;;  %s598_s4 = scalar_lea.vmem %s414_s16, 128 }
  0x37   :  { %v423_v1 = vld [vmem:[%s855_s6] ss:$0 sm:$0xff]  ;;  %p599_p8 = scmp.ne.s32.totalorder %s414_s16, %s598_s4  ;;  %p604_p10 = scmp.lt.s32.totalorder %s598_s4, %s598_s4 }
  0x38   :  { %506 = vmatpush1.bf16.msra.mxu1 %v505_v11  ;;  %v318_v11 = vld [vmem:[%s854_s5 + $0xb0] sm:$0xff]  ;;  %548 = vmatprep.subr.bf16.mxu0 %v547_v8 }
  0x39   :  { %508 = vmatprep.subr.bf16.mxu1 %v507_v12  ;;  %v319_v12 = vld [vmem:[%s854_s5 + $0xb8] sm:$0xff]  ;;  %p605_p11 = por %p604_p10, %p603_p9 }
  0x3a   :  { %v551_v14 = vpack.c.bf16 %v319_v12, %v318_v11  ;;  %550 = vmatpush3.bf16.msra.mxu0 %v549_v13 }
  0x3b   :  { %p606_p12 = pnand %p605_p11, %p599_p8 }
  0x3c   :  { %510 = vmatpush1.bf16.msra.mxu1 %v509_v17  ;;  %v320_v17 = vld [vmem:[%s854_s5 + $0xc0] sm:$0xff]  ;;  %552 = vmatprep.subr.bf16.mxu0 %v551_v14 }
  0x3d   :  { %512 = vmatprep.subr.bf16.mxu1 %v511_v18  ;;  %v321_v18 = vld [vmem:[%s854_s5 + $0xc8] sm:$0xff] }
  0x3e   :  { %v555_v20 = vpack.c.bf16 %v321_v18, %v320_v17  ;;  %554 = vmatpush3.bf16.msra.mxu0 %v553_v19 }
  0x40   :  { %514 = vmatpush1.bf16.msra.mxu1 %v513_v23  ;;  %v322_v23 = vld [vmem:[%s854_s5 + $0xd0] sm:$0xff]  ;;  %556 = vmatprep.subr.bf16.mxu0 %v555_v20 }
  0x41   :  { %516 = vmatprep.subr.bf16.mxu1 %v515_v24  ;;  %v323_v24 = vld [vmem:[%s854_s5 + $0xd8] sm:$0xff] }
  0x42   :  { %v559_v26 = vpack.c.bf16 %v323_v24, %v322_v23  ;;  %558 = vmatpush3.bf16.msra.mxu0 %v557_v25 }
  0x44   :  { %518 = vmatpush1.bf16.msra.mxu1 %v517_v29  ;;  %v324_v29 = vld [vmem:[%s854_s5 + $0xe0] sm:$0xff]  ;;  %560 = vmatprep.subr.bf16.mxu0 %v559_v26 }
  0x45   :  { %520 = vmatprep.subr.bf16.mxu1 %v519_v30  ;;  %v325_v30 = vld [vmem:[%s854_s5 + $0xe8] sm:$0xff] }
  0x46   :  { %v563_v32 = vpack.c.bf16 %v325_v30, %v324_v29  ;;  %562 = vmatpush3.bf16.msra.mxu0 %v561_v31 }
  0x48   :  { %522 = vmatpush1.bf16.msra.mxu1 %v521_v35  ;;  %564 = vmatprep.subr.bf16.mxu0 %v563_v32  ;;  %v62_v35 = vsub.s32 0, %v61_v34 }
  0x49   :  { %524 = vmatprep.subr.bf16.mxu1 %v523_v36  ;;  %v58_v36 = vld [vmem:[%s851_s2] sm:$0x3] }
  0x4a   :  { %v63_v38 = vrot.slane %v58_v36, %v62_v35  ;;  %v67_v39 = vrot.slane %v58_v36, %v66_v37  ;;  %v216_v56 = vrot.slane %v211_v55, %v62_v35 }
  0x4c   :  { %526 = vmatpush1.bf16.msra.mxu1 %v525_v41 }
  0x4d   :  { %528 = vmatprep.subr.bf16.mxu1 %v527_v42 }
  0x50   :  { %530 = vmatpush1.bf16.msra.mxu1 %v529_v47  ;;  %v309_v47 = vld [vmem:[%s854_s5 + $0x68] sm:$0xff] }
  0x51   :  { %532 = vmatprep.subr.bf16.mxu1 %v531_v48  ;;  %v565_v48 = vpack.c.bf16 %v309_v47, %v308_v46 }
  0x53   :  { %566 = vmatpush3.bf16.msra.mxu0 %v565_v48 }
  0x54   :  { %534 = vmatpush1.bf16.msra.mxu1 %v533_v51  ;;  %v567_v51 = vpack.c.bf16 %v327_v50, %v326_v49 }
  0x55   :  { %536 = vmatprep.subr.bf16.mxu1 %v535_v54  ;;  %v569_v54 = vpack.c.bf16 %v311_v53, %v310_v52 }
  0x56   :  { %568 = vmatprep.subr.bf16.mxu0 %v567_v51 }
  0x57   :  { %570 = vmatpush3.bf16.msra.mxu0 %v569_v54 }
  0x58   :  { %538 = vmatpush1.bf16.msra.mxu1 %v537_v57  ;;  %v220_v57 = vrot.slane %v211_v55, %v66_v37 }
  0xf9   :  { %v140_v40 = vpop.f32.mrb[0].mxu0 }
  0xfa   :  { %v141_v41 = vadd.f32 %v140_v40, %v63_v38  ;;  %v142_v42 = vpop.f32.mrb[1].mxu0 }
  0xfb   :  { %v143_v43 = vadd.f32 %v142_v42, %v67_v39 }
  0xfc   :  { %v145_v45 = vmax.f32 %v141_v41, 0.0 }
  0xfd   :  { %v146_v44 = vmax.f32 %v143_v43, 0.0 }
  0xff   :  { %287 = vmatprep.mubr.f32.mxu1 %v146_v44 }
 0x100   :  { %288 = vmatmul.mubr.f32.vlgmr.msra.gmra.mrb[0].mxu1 %v145_v45 }
 0x1d3   :  { %v289_v58 = vpop.f32.mrb[0].mxu1 }
 0x1d4   :  { %v290_v59 = vadd.f32 %v289_v58, %v216_v56  ;;  %v291_v60 = vpop.f32.mrb[1].mxu1 }
 0x1d5   :  { %v292_v61 = vadd.f32 %v291_v60, %v220_v57 }
 0x1d6   :  { %v294_v63 = vmax.f32 %v290_v59, 0.0 }
 0x1d7   :  { %v295_v62 = vmax.f32 %v292_v61, 0.0 }
 0x1d9   :  { %399 = vmatprep.mubr.f32.mxu0 %v295_v62 }
 0x1da   :  { %400 = vmatmul.mubr.f32.vlgmr.msra.gmra.mrb[2].mxu0 %v294_v63 }
 0x2ad   :  { %v456_v0 = vpop.f32.mrb[2].mxu0 }
 0x2ae   :  { %v457_v2 = vpop.f32.mrb[3].mxu0 }
 0x2af   :  { %v458_v3 = vadd.f32 %v457_v2, %v456_v0 }
 0x2b1   :  { %v402_v4 = vadd.f32 %v458_v3, %v423_v1 }
 0x2b3   :  { %406 = vst.msk [vmem:[#allocation5] sm:$0xff] %vm405_vm1, %v402_v4 }
 0x2b4   :  { %609 = shalt.err (!%p606_p12)
}
 0x2b5   :  { %s610_s19 = scalar_lea.hbm %s856_s7, 128 }
 0x2b6   :  { %p611_p13 = scmp.ne.s32.totalorder %s856_s7, %s610_s19  ;;  %p614_p0 = scmp.lt.u32.totalorder %s610_s19, %s856_s7 }
 0x2b8   :  { %p616_p1 = pnand %p614_p0, %p611_p13 }
 0x2ba   :  { %619 = shalt.err (!%p616_p1)
}
 0x2bb   :  { %416 = dma.vmem_to_hbm [thread:$0]  %s414_s16, 128, %s856_s7, [#allocation4]  }
 0x2bc   :  { %622 = dma.done.wait [#allocation4], 128  }
 0x2bd   :  { %623 = vsyncadd [#allocation4], 4294967168 }
 0x2be   :  { %420 = vsyncpa [#allocation3], 1 }
 0x2bf   :  { %421 = vsyncpa [#allocation4], 1 }

</bundles_post_ra>
